<compile_context>
chip_gen: v7x
topology: tpu7x:2x2x1
jax: 0.10.0
libtpu: 0.0.40
codegen_flags: <defaults>
</compile_context>

<pallas_src>
import math

import jax
import jax.numpy as jnp
from jax.experimental import pallas as pl
from jax.experimental.pallas import tpu as pltpu


def _round_up(x, m):
    return ((x + m - 1) // m) * m


def _make_conv_kernel(KH, KW, Cin, dh, dw, Wpp, Lacc, K, K_pad, apply_prelu):
    """Kernel closure over static conv geometry.

    Per grid step:
      1. build im2col patch (K_pad, Lacc) in VMEM scratch from lane-shifted slices
         of the flattened input tile (one static shift per kernel tap),
      2. ONE MXU contraction (Cout, K_pad) @ (K_pad, Lacc), bf16 in / f32 accumulate,
      3. folded BN/bias scale+shift (+ optional PReLU) in f32,
      4. lane-dense store of the (Cout, Lacc) tile (Lacc is a multiple of 128).
    """

    def kernel(x_ref, w_ref, scale_ref, shift_ref, *rest):
        if apply_prelu:
            alpha_ref, o_ref, patch_ref = rest
        else:
            o_ref, patch_ref = rest

        # im2col: row block (kh, kw) holds the input shifted by the tap offset.
        for kh in range(KH):
            for kw in range(KW):
                tap = kh * KW + kw
                s = kh * dh * Wpp + kw * dw                     # static lane shift
                patch_ref[tap * Cin:(tap + 1) * Cin, :] = x_ref[:, s:s + Lacc]
        if K_pad > K:
            # Zero the K-padding rows (their weights are zero, but uninitialized
            # scratch could hold NaN and 0*NaN would poison the accumulator).
            patch_ref[K:K_pad, :] = jnp.zeros((K_pad - K, Lacc), patch_ref.dtype)

        # Single fused contraction over K = KH*KW*Cin, f32 accumulation on the MXU.
        acc = jnp.dot(w_ref[...], patch_ref[...],
                      preferred_element_type=jnp.float32)        # (Cout, Lacc)

        # Folded BatchNorm / bias; (Cout, 1) broadcasts along the lane axis.
        y = acc * scale_ref[...] + shift_ref[...]
        if apply_prelu:
            y = jnp.where(y >= 0.0, y, alpha_ref[...] * y)
        o_ref[...] = y.astype(o_ref.dtype)

    return kernel


def conv_forward(x_nchw, weight_oihw, *, stride=(1, 1), padding=(1, 1),
                 dilation=(1, 1), groups=1, bias=None,
                 bn_acti=False, bn_params=None, eps=1e-3, row_tile=8):
    """Forward of the PyTorch `Conv` module (conv [+ BN(eval) + PReLU]).

    x_nchw:      [N, Cin, H, W]
    weight_oihw: [Cout, Cin, KH, KW]
    bn_params:   (gamma, beta, running_mean, running_var, prelu_alpha), each [Cout]
    returns:     [N, Cout, Hout, Wout] float32
    """
    # TODO(synk): stride > 1 and groups > 1 not implemented in the Pallas kernel.
    assert stride == (1, 1), "only stride=(1,1) supported in this kernel"
    assert groups == 1, "only groups=1 supported in this kernel"

    N, Cin, H, W = x_nchw.shape
    Cout, _, KH, KW = weight_oihw.shape
    ph, pw = padding
    dh, dw = dilation
    Hout = H + 2 * ph - dh * (KH - 1)
    Wout = W + 2 * pw - dw * (KW - 1)

    # ---- tile geometry (row_tile should be raised e.g. to 64 for large images; kept
    #      modest here so the example still exercises the row-tiled grid) ----
    TH = min(row_tile, Hout)                     # output rows per tile
    T = -(-Hout // TH)                           # number of row tiles (cdiv)
    THin = TH + dh * (KH - 1)                    # input rows per tile (with halo)
    # Padded row width such that the flattened accumulator TH*Wpp is a multiple of 128.
    Wpp = _round_up(W + 2 * pw, 128 // math.gcd(TH, 128))
    Lacc = TH * Wpp                              # lane-dense flat tile length
    flat_in = _round_up(THin * Wpp + dw * (KW - 1), 128)
    K = KH * KW * Cin
    K_pad = _round_up(K, 16)

    # ---- prepare inputs: bf16 for the MXU (accumulation stays f32 in-kernel) ----
    x = x_nchw.astype(jnp.bfloat16)
    extra_rows = T * TH - Hout                   # bottom rows so T*TH covers Hout
    x_pad = jnp.pad(x, ((0, 0), (0, 0),
                        (ph, ph + extra_rows),
                        (pw, Wpp - W - pw)))     # (N, Cin, T*TH + dh*(KH-1), Wpp)
    # Overlapping row tiles (halo materialized once in the wrapper): (N, T, Cin, THin, Wpp)
    row_idx = jnp.arange(T)[:, None] * TH + jnp.arange(THin)[None, :]
    x_tiles = jnp.transpose(x_pad[:, :, row_idx, :], (0, 2, 1, 3, 4))
    x_flat = x_tiles.reshape(N, T, Cin, THin * Wpp)
    x_flat = jnp.pad(x_flat, ((0, 0), (0, 0), (0, 0), (0, flat_in - THin * Wpp)))

    # OIHW -> (Cout, KH*KW*Cin) ordered (kh, kw, cin) to match the im2col rows.
    w_mat = jnp.transpose(weight_oihw, (0, 2, 3, 1)).reshape(Cout, K)
    w_mat = jnp.pad(w_mat, ((0, 0), (0, K_pad - K))).astype(jnp.bfloat16)

    if bn_acti:
        # TODO(synk): training-mode BatchNorm (batch statistics) not implemented;
        # eval-mode running stats are folded into per-channel scale/shift.
        gamma, beta, mean, var, alpha = bn_params
        scale = gamma / jnp.sqrt(var + eps)
        shift = beta - mean * scale
        if bias is not None:
            shift = shift + scale * bias
    else:
        scale = jnp.ones((Cout,), jnp.float32)
        shift = (bias.astype(jnp.float32) if bias is not None
                 else jnp.zeros((Cout,), jnp.float32))
        alpha = None

    scale = scale.reshape(Cout, 1).astype(jnp.float32)
    shift = shift.reshape(Cout, 1).astype(jnp.float32)

    small_spec = pl.BlockSpec((Cout, 1), lambda n, t: (0, 0))
    in_specs = [
        pl.BlockSpec((None, None, Cin, flat_in), lambda n, t: (n, t, 0, 0)),
        pl.BlockSpec((Cout, K_pad), lambda n, t: (0, 0)),   # resident weight
        small_spec, small_spec,
    ]
    operands = [x_flat, w_mat, scale, shift]
    if bn_acti:
        in_specs.append(small_spec)
        operands.append(alpha.reshape(Cout, 1).astype(jnp.float32))

    kernel = _make_conv_kernel(KH, KW, Cin, dh, dw, Wpp, Lacc, K, K_pad, bn_acti)

    out = pl.pallas_call(
        kernel,
        out_shape=jax.ShapeDtypeStruct((N, T, Cout, Lacc), jnp.float32),
        grid_spec=pltpu.PrefetchScalarGridSpec(
            num_scalar_prefetch=0,
            grid=(N, T),
            in_specs=in_specs,
            out_specs=pl.BlockSpec((None, None, Cout, Lacc),
                                   lambda n, t: (n, t, 0, 0)),
            scratch_shapes=[pltpu.VMEM((K_pad, Lacc), jnp.bfloat16)],
        ),
        compiler_params=pltpu.CompilerParams(
            dimension_semantics=("parallel", "parallel"),
            vmem_limit_bytes=32 * 1024 * 1024),
    )(*operands)

    # (N, T, Cout, TH*Wpp) -> NCHW, dropping the width/row padding (garbage columns).
    out = out.reshape(N, T, Cout, TH, Wpp)[:, :, :, :, :Wout]
    out = jnp.transpose(out, (0, 2, 1, 3, 4)).reshape(N, Cout, T * TH, Wout)
    return out[:, :, :Hout, :]


def _reference(x_nchw, w_oihw, scale, shift, alpha, padding, dilation):
    """Pure-JAX reference (conv + folded BN + PReLU) for correctness checking."""
    y = jax.lax.conv_general_dilated(
        x_nchw, w_oihw, window_strides=(1, 1),
        padding=((padding[0], padding[0]), (padding[1], padding[1])),
        rhs_dilation=dilation,
        dimension_numbers=("NCHW", "OIHW", "NCHW"))
    y = y * scale.reshape(1, -1, 1, 1) + shift.reshape(1, -1, 1, 1)
    return jnp.where(y >= 0.0, y, alpha.reshape(1, -1, 1, 1) * y)


if __name__ == "__main__":
    # Module config: Conv(in=4, out=8, kernel_size=3, stride=1, padding=1,
    #                     dilation=(1,1), groups=1, bn_acti=True, bias=False)
    N, Cin, H, W = 2, 4, 16, 16
    Cout, KH, KW = 8, 3, 3
    eps = 1e-3

    key = jax.random.PRNGKey(0)
    kx, kwt, kg, kb, km, kv = jax.random.split(key, 6)

    x = jax.random.normal(kx, (N, Cin, H, W), dtype=jnp.float32)
    weight = jax.random.normal(kwt, (Cout, Cin, KH, KW), dtype=jnp.float32) * 0.1

    # Deterministic synthetic BN (eval-mode running stats) + PReLU params.
    gamma = 1.0 + 0.1 * jax.random.normal(kg, (Cout,), dtype=jnp.float32)
    beta = 0.1 * jax.random.normal(kb, (Cout,), dtype=jnp.float32)
    running_mean = 0.05 * jax.random.normal(km, (Cout,), dtype=jnp.float32)
    running_var = 1.0 + 0.1 * jax.random.uniform(kv, (Cout,), dtype=jnp.float32)
    prelu_alpha = jnp.full((Cout,), 0.25, dtype=jnp.float32)  # PyTorch PReLU init

    out = conv_forward(
        x, weight,
        stride=(1, 1), padding=(1, 1), dilation=(1, 1), groups=1,
        bias=None, bn_acti=True,
        bn_params=(gamma, beta, running_mean, running_var, prelu_alpha),
        eps=eps,
    )
    out = jax.block_until_ready(out)

    # Reference with the same bf16 rounding of x / w as the kernel's MXU inputs.
    xr = x.astype(jnp.bfloat16).astype(jnp.float32)
    wr = weight.astype(jnp.bfloat16).astype(jnp.float32)
    scale = gamma / jnp.sqrt(running_var + eps)
    shift = beta - running_mean * scale
    ref = _reference(xr, wr, scale, shift, prelu_alpha,
                     padding=(1, 1), dilation=(1, 1))

    assert out.shape == (N, Cout, H, W), out.shape
    max_err = float(jnp.max(jnp.abs(out - ref)))
    assert jnp.allclose(out, ref, atol=5e-3, rtol=5e-3), max_err

    print("KERNEL_OK")
</pallas_src>

<mosaic_0001>
module attributes {stable_mosaic.version = 11 : i64} {
  func.func @kernel(%arg0: i32, %arg1: i32, %arg2: memref<1x1x4x384xbf16, #tpu.memory_space<vmem>>, %arg3: memref<8x48xbf16, #tpu.memory_space<vmem>>, %arg4: memref<8x1xf32, #tpu.memory_space<vmem>>, %arg5: memref<8x1xf32, #tpu.memory_space<vmem>>, %arg6: memref<8x1xf32, #tpu.memory_space<vmem>>, %arg7: memref<1x1x8x256xf32, #tpu.memory_space<vmem>>, %arg8: memref<48x256xbf16, #tpu.memory_space<vmem>>) attributes {dimension_semantics = [#tpu.dimension_semantics<parallel>, #tpu.dimension_semantics<parallel>], iteration_bounds = array<i64: 2, 2>, scalar_prefetch = 0 : i64, scratch_operands = 1 : i64, tpu.core_type = #tpu.core_type<tc>, window_params = [{transform_indices = @transform_0, window_bounds = array<i64: 1, 1, 4, 384>}, {pipeline_mode = #tpu.pipeline_mode<synchronous>, transform_indices = @transform_1, window_bounds = array<i64: 8, 48>}, {pipeline_mode = #tpu.pipeline_mode<synchronous>, transform_indices = @transform_2, window_bounds = array<i64: 8, 1>}, {pipeline_mode = #tpu.pipeline_mode<synchronous>, transform_indices = @transform_3, window_bounds = array<i64: 8, 1>}, {pipeline_mode = #tpu.pipeline_mode<synchronous>, transform_indices = @transform_4, window_bounds = array<i64: 8, 1>}, {transform_indices = @transform_5, window_bounds = array<i64: 1, 1, 8, 256>}]} {
    %c0 = arith.constant 0 : index
    %c0_0 = arith.constant 0 : index
    %c0_1 = arith.constant 0 : index
    %c0_2 = arith.constant 0 : index
    %0 = vector.load %arg2[%c0, %c0_0, %c0_1, %c0_2] : memref<1x1x4x384xbf16, #tpu.memory_space<vmem>>, vector<1x1x4x256xbf16>
    %1 = vector.shape_cast %0 : vector<1x1x4x256xbf16> to vector<4x256xbf16>
    %c0_3 = arith.constant 0 : index
    %c0_4 = arith.constant 0 : index
    %2 = vector.load %arg8[%c0_3, %c0_4] : memref<48x256xbf16, #tpu.memory_space<vmem>>, vector<4x256xbf16>
    tpu.vector_store %arg8[%c0_3, %c0_4], %1 {strides = array<i32>} : memref<48x256xbf16, #tpu.memory_space<vmem>>, vector<4x256xbf16>,
    %c0_5 = arith.constant 0 : index
    %c0_6 = arith.constant 0 : index
    %c0_7 = arith.constant 0 : index
    %c1 = arith.constant 1 : index
    %3 = vector.load %arg2[%c0_5, %c0_6, %c0_7, %c1] : memref<1x1x4x384xbf16, #tpu.memory_space<vmem>>, vector<1x1x4x256xbf16>
    %4 = vector.shape_cast %3 : vector<1x1x4x256xbf16> to vector<4x256xbf16>
    %c4 = arith.constant 4 : index
    %c0_8 = arith.constant 0 : index
    %5 = vector.load %arg8[%c4, %c0_8] : memref<48x256xbf16, #tpu.memory_space<vmem>>, vector<4x256xbf16>
    tpu.vector_store %arg8[%c4, %c0_8], %4 {strides = array<i32>} : memref<48x256xbf16, #tpu.memory_space<vmem>>, vector<4x256xbf16>,
    %c0_9 = arith.constant 0 : index
    %c0_10 = arith.constant 0 : index
    %c0_11 = arith.constant 0 : index
    %c2 = arith.constant 2 : index
    %6 = vector.load %arg2[%c0_9, %c0_10, %c0_11, %c2] : memref<1x1x4x384xbf16, #tpu.memory_space<vmem>>, vector<1x1x4x256xbf16>
    %7 = vector.shape_cast %6 : vector<1x1x4x256xbf16> to vector<4x256xbf16>
    %c8 = arith.constant 8 : index
    %c0_12 = arith.constant 0 : index
    %8 = vector.load %arg8[%c8, %c0_12] : memref<48x256xbf16, #tpu.memory_space<vmem>>, vector<4x256xbf16>
    tpu.vector_store %arg8[%c8, %c0_12], %7 {strides = array<i32>} : memref<48x256xbf16, #tpu.memory_space<vmem>>, vector<4x256xbf16>,
    %c0_13 = arith.constant 0 : index
    %c0_14 = arith.constant 0 : index
    %c0_15 = arith.constant 0 : index
    %c32 = arith.constant 32 : index
    %9 = vector.load %arg2[%c0_13, %c0_14, %c0_15, %c32] : memref<1x1x4x384xbf16, #tpu.memory_space<vmem>>, vector<1x1x4x256xbf16>
    %10 = vector.shape_cast %9 : vector<1x1x4x256xbf16> to vector<4x256xbf16>
    %c12 = arith.constant 12 : index
    %c0_16 = arith.constant 0 : index
    %11 = vector.load %arg8[%c12, %c0_16] : memref<48x256xbf16, #tpu.memory_space<vmem>>, vector<4x256xbf16>
    tpu.vector_store %arg8[%c12, %c0_16], %10 {strides = array<i32>} : memref<48x256xbf16, #tpu.memory_space<vmem>>, vector<4x256xbf16>,
    %c0_17 = arith.constant 0 : index
    %c0_18 = arith.constant 0 : index
    %c0_19 = arith.constant 0 : index
    %c33 = arith.constant 33 : index
    %12 = vector.load %arg2[%c0_17, %c0_18, %c0_19, %c33] : memref<1x1x4x384xbf16, #tpu.memory_space<vmem>>, vector<1x1x4x256xbf16>
    %13 = vector.shape_cast %12 : vector<1x1x4x256xbf16> to vector<4x256xbf16>
    %c16 = arith.constant 16 : index
    %c0_20 = arith.constant 0 : index
    %14 = vector.load %arg8[%c16, %c0_20] : memref<48x256xbf16, #tpu.memory_space<vmem>>, vector<4x256xbf16>
    tpu.vector_store %arg8[%c16, %c0_20], %13 {strides = array<i32>} : memref<48x256xbf16, #tpu.memory_space<vmem>>, vector<4x256xbf16>,
    %c0_21 = arith.constant 0 : index
    %c0_22 = arith.constant 0 : index
    %c0_23 = arith.constant 0 : index
    %c34 = arith.constant 34 : index
    %15 = vector.load %arg2[%c0_21, %c0_22, %c0_23, %c34] : memref<1x1x4x384xbf16, #tpu.memory_space<vmem>>, vector<1x1x4x256xbf16>
    %16 = vector.shape_cast %15 : vector<1x1x4x256xbf16> to vector<4x256xbf16>
    %c20 = arith.constant 20 : index
    %c0_24 = arith.constant 0 : index
    %17 = vector.load %arg8[%c20, %c0_24] : memref<48x256xbf16, #tpu.memory_space<vmem>>, vector<4x256xbf16>
    tpu.vector_store %arg8[%c20, %c0_24], %16 {strides = array<i32>} : memref<48x256xbf16, #tpu.memory_space<vmem>>, vector<4x256xbf16>,
    %c0_25 = arith.constant 0 : index
    %c0_26 = arith.constant 0 : index
    %c0_27 = arith.constant 0 : index
    %c64 = arith.constant 64 : index
    %18 = vector.load %arg2[%c0_25, %c0_26, %c0_27, %c64] : memref<1x1x4x384xbf16, #tpu.memory_space<vmem>>, vector<1x1x4x256xbf16>
    %19 = vector.shape_cast %18 : vector<1x1x4x256xbf16> to vector<4x256xbf16>
    %c24 = arith.constant 24 : index
    %c0_28 = arith.constant 0 : index
    %20 = vector.load %arg8[%c24, %c0_28] : memref<48x256xbf16, #tpu.memory_space<vmem>>, vector<4x256xbf16>
    tpu.vector_store %arg8[%c24, %c0_28], %19 {strides = array<i32>} : memref<48x256xbf16, #tpu.memory_space<vmem>>, vector<4x256xbf16>,
    %c0_29 = arith.constant 0 : index
    %c0_30 = arith.constant 0 : index
    %c0_31 = arith.constant 0 : index
    %c65 = arith.constant 65 : index
    %21 = vector.load %arg2[%c0_29, %c0_30, %c0_31, %c65] : memref<1x1x4x384xbf16, #tpu.memory_space<vmem>>, vector<1x1x4x256xbf16>
    %22 = vector.shape_cast %21 : vector<1x1x4x256xbf16> to vector<4x256xbf16>
    %c28 = arith.constant 28 : index
    %c0_32 = arith.constant 0 : index
    %23 = vector.load %arg8[%c28, %c0_32] : memref<48x256xbf16, #tpu.memory_space<vmem>>, vector<4x256xbf16>
    tpu.vector_store %arg8[%c28, %c0_32], %22 {strides = array<i32>} : memref<48x256xbf16, #tpu.memory_space<vmem>>, vector<4x256xbf16>,
    %c0_33 = arith.constant 0 : index
    %c0_34 = arith.constant 0 : index
    %c0_35 = arith.constant 0 : index
    %c66 = arith.constant 66 : index
    %24 = vector.load %arg2[%c0_33, %c0_34, %c0_35, %c66] : memref<1x1x4x384xbf16, #tpu.memory_space<vmem>>, vector<1x1x4x256xbf16>
    %25 = vector.shape_cast %24 : vector<1x1x4x256xbf16> to vector<4x256xbf16>
    %c32_36 = arith.constant 32 : index
    %c0_37 = arith.constant 0 : index
    %26 = vector.load %arg8[%c32_36, %c0_37] : memref<48x256xbf16, #tpu.memory_space<vmem>>, vector<4x256xbf16>
    tpu.vector_store %arg8[%c32_36, %c0_37], %25 {strides = array<i32>} : memref<48x256xbf16, #tpu.memory_space<vmem>>, vector<4x256xbf16>,
    %cst = arith.constant 0.000000e+00 : bf16
    %27 = vector.broadcast %cst : bf16 to vector<12x256xbf16>
    %c36 = arith.constant 36 : index
    %c0_38 = arith.constant 0 : index
    %28 = vector.load %arg8[%c36, %c0_38] : memref<48x256xbf16, #tpu.memory_space<vmem>>, vector<12x256xbf16>
    tpu.vector_store %arg8[%c36, %c0_38], %27 {strides = array<i32>} : memref<48x256xbf16, #tpu.memory_space<vmem>>, vector<12x256xbf16>,
    %c0_39 = arith.constant 0 : index
    %c0_40 = arith.constant 0 : index
    %29 = vector.load %arg3[%c0_39, %c0_40] : memref<8x48xbf16, #tpu.memory_space<vmem>>, vector<8x48xbf16>
    %c0_41 = arith.constant 0 : index
    %c0_42 = arith.constant 0 : index
    %30 = vector.load %arg8[%c0_41, %c0_42] : memref<48x256xbf16, #tpu.memory_space<vmem>>, vector<48x256xbf16>
    %cst_43 = arith.constant dense<0.000000e+00> : vector<8x256xf32>
    %31 = tpu.matmul %29, %30, %cst_43 {dimension_numbers = #tpu.dot_dimension_numbers<[1], [0], [0], [1], [0, 0, 1, 1], [], []>} : vector<8x48xbf16>, vector<48x256xbf16>, vector<8x256xf32> -> vector<8x256xf32>
    %c0_44 = arith.constant 0 : index
    %c0_45 = arith.constant 0 : index
    %32 = vector.load %arg4[%c0_44, %c0_45] : memref<8x1xf32, #tpu.memory_space<vmem>>, vector<8x1xf32>
    %33 = vector.broadcast %32 : vector<8x1xf32> to vector<8x256xf32>
    %34 = arith.mulf %31, %33 : vector<8x256xf32>
    %c0_46 = arith.constant 0 : index
    %c0_47 = arith.constant 0 : index
    %35 = vector.load %arg5[%c0_46, %c0_47] : memref<8x1xf32, #tpu.memory_space<vmem>>, vector<8x1xf32>
    %36 = vector.broadcast %35 : vector<8x1xf32> to vector<8x256xf32>
    %37 = arith.addf %34, %36 : vector<8x256xf32>
    %cst_48 = arith.constant 0.000000e+00 : f32
    %38 = vector.broadcast %cst_48 : f32 to vector<8x256xf32>
    %39 = arith.cmpf oge, %37, %38 : vector<8x256xf32>
    %c0_49 = arith.constant 0 : index
    %c0_50 = arith.constant 0 : index
    %40 = vector.load %arg6[%c0_49, %c0_50] : memref<8x1xf32, #tpu.memory_space<vmem>>, vector<8x1xf32>
    %41 = vector.broadcast %40 : vector<8x1xf32> to vector<8x256xf32>
    %42 = arith.mulf %41, %37 : vector<8x256xf32>
    %43 = arith.select %39, %37, %42 : vector<8x256xi1>, vector<8x256xf32>
    %c0_51 = arith.constant 0 : index
    %c0_52 = arith.constant 0 : index
    %c0_53 = arith.constant 0 : index
    %c0_54 = arith.constant 0 : index
    %44 = vector.load %arg7[%c0_51, %c0_52, %c0_53, %c0_54] : memref<1x1x8x256xf32, #tpu.memory_space<vmem>>, vector<1x1x8x256xf32>
    %45 = vector.shape_cast %44 : vector<1x1x8x256xf32> to vector<8x256xf32>
    %46 = vector.shape_cast %43 : vector<8x256xf32> to vector<1x1x8x256xf32>
    tpu.vector_store %arg7[%c0_51, %c0_52, %c0_53, %c0_54], %46 {strides = array<i32>} : memref<1x1x8x256xf32, #tpu.memory_space<vmem>>, vector<1x1x8x256xf32>,
    return
  }
  func.func @transform_0(%arg0: i32, %arg1: i32) -> (i32, i32, i32, i32) {
    %c0_i32 = arith.constant 0 : i32
    %c0_i32_0 = arith.constant 0 : i32
    %c0_i32_1 = arith.constant 0 : i32
    return %arg0, %arg1, %c0_i32, %c0_i32_0 : i32, i32, i32, i32
  }
  func.func @transform_1(%arg0: i32, %arg1: i32) -> (i32, i32) {
    %c0_i32 = arith.constant 0 : i32
    %c0_i32_0 = arith.constant 0 : i32
    %c0_i32_1 = arith.constant 0 : i32
    return %c0_i32, %c0_i32_0 : i32, i32
  }
  func.func @transform_2(%arg0: i32, %arg1: i32) -> (i32, i32) {
    %c0_i32 = arith.constant 0 : i32
    %c0_i32_0 = arith.constant 0 : i32
    %c0_i32_1 = arith.constant 0 : i32
    return %c0_i32, %c0_i32_0 : i32, i32
  }
  func.func @transform_3(%arg0: i32, %arg1: i32) -> (i32, i32) {
    %c0_i32 = arith.constant 0 : i32
    %c0_i32_0 = arith.constant 0 : i32
    %c0_i32_1 = arith.constant 0 : i32
    return %c0_i32, %c0_i32_0 : i32, i32
  }
  func.func @transform_4(%arg0: i32, %arg1: i32) -> (i32, i32) {
    %c0_i32 = arith.constant 0 : i32
    %c0_i32_0 = arith.constant 0 : i32
    %c0_i32_1 = arith.constant 0 : i32
    return %c0_i32, %c0_i32_0 : i32, i32
  }
  func.func @transform_5(%arg0: i32, %arg1: i32) -> (i32, i32, i32, i32) {
    %c0_i32 = arith.constant 0 : i32
    %c0_i32_0 = arith.constant 0 : i32
    %c0_i32_1 = arith.constant 0 : i32
    return %arg0, %arg1, %c0_i32, %c0_i32_0 : i32, i32, i32, i32
  }
}

</mosaic_0001>

<bundles_post_ra>
// kernel: tpu_custom_call.1
= control target key start
LH: loop header
LB: loop body
LE: loop exit
PB: predicated region body
PF: predicated region fallthrough
CT: control target
= control target key end

     0   :  { %10 = vsyncpa [#allocation4], 0  ;;  %s1136_s0 = inlined_call_operand.vmem [shape: bf16[2,2,4,384], index: 0, kind: input, shape index: {}]   ;;  %s1137_s1 = inlined_call_operand.vmem [shape: bf16[8,48], index: 1, kind: input, shape index: {}]   ;;  %s1138_s2 = inlined_call_operand.vmem [shape: f32[8,1], index: 2, kind: input, shape index: {}]   ;;  %s1139_s3 = inlined_call_operand.vmem [shape: f32[8,1], index: 3, kind: input, shape index: {}]   ;;  %s1140_s4 = inlined_call_operand.vmem [shape: f32[8,1], index: 4, kind: input, shape index: {}]   ;;  %s1141_s5 = inlined_call_operand.hbm [shape: f32[2,2,8,256], index: 5, kind: output, shape index: {}]  }
   0x1   :  { %12 = vsyncpa [#allocation4 + $0x1], 0  ;;  %s946_s18 = smov 0   ;;  %s948_s19 = smov 0  }
   0x2   :  { %s950_s20 = smov 0   ;;  %s952_s21 = smov 0  }
   0x3   :  { %s954_s22 = smov 0   ;;  %s956_s23 = smov 0  }
   0x4   :  { %s958_s24 = smov 0   ;;  %s960_s25 = smov 0  }
   0x5 LB: > { %s701_s26 = sadd.s32 4294967295, %s903_s25   ;;  %s702_s27 = sadd.s32 4294967294, %s903_s25   ;;  %s903_s25 = sphi %s960_s25, %s18_s25   ;;  %s899_s24 = sphi %s958_s24, %s1150_s24   ;;  %s895_s23 = sphi %s956_s23, %s1149_s23   ;;  %s891_s22 = sphi %s954_s22, %s1148_s22   ;;  %s887_s21 = sphi %s952_s21, %s1147_s21   ;;  %s883_s20 = sphi %s950_s20, %s1146_s20   ;;  %s879_s19 = sphi %s948_s19, %s1145_s19   ;;  %s875_s18 = sphi %s946_s18, %s1144_s18  }
   0x6   : > { %s27_s28 = sadd.s32 1, %s895_s23  ;;  %s30_s29 = sadd.s32 1, %s899_s24 }
   0x7   : > { %p28_p0 = scmp.ge.s32.totalorder %s27_s28, 2  ;;  %p161_p1 = scmp.ne.s32.totalorder %s883_s20, %s879_s19 }
   0x8   : > { %p162_p2 = scmp.eq.s32.totalorder %s701_s26, 3  ;;  %p167_p5 = scmp.ne.s32.totalorder %s879_s19, %s875_s18 }
   0x9   : > { %s1152_s28 = smov (%p28_p0, %s27_s28), 0  ;;  %s1154_s29 = smov (!%p28_p0, %s30_s29), %s899_s24 }
   0xa   : > { %s147_s30 = ssub.s32 %s895_s23, %s1152_s28  ;;  %p997_p3 = por %p162_p2, %p161_p1 }
   0xb   : > { %p32_p4 = scmp.ge.s32.totalorder %s1154_s29, 2  ;;  %p168_p6 = scmp.eq.s32.totalorder %s702_s27, 3 }
   0xc   : > { %p705_p7 = scmp.ge.s32.totalorder %s903_s25, 1  ;;  %p210_p9 = scmp.lt.s32.totalorder %s903_s25, 5 }
   0xd   : > { %s1156_s29 = smov (%p32_p4, %s1154_s29), 0  ;;  %p1006_p8 = por %p168_p6, %p167_p5 }
   0xe   : > { %s146_s8 = ssub.s32 %s899_s24, %s1156_s29  ;;  %s151_s9 = sadd.s32 1, %s883_s20 }
   0xf   : > { %s148_s10 = sor.u32 %s147_s30, %s146_s8  ;;  %p211_p10 = pnand %p705_p7, %p210_p9 }
  0x10   : > { %p149_p11 = scmp.eq.s32.totalorder %s148_s10, 0  ;;  %p242_p12 = scmp.lt.s32.totalorder (!%p211_p10), %s891_s22, 1  ;;  %v272_v0 = vlaneseq (!%p211_p10)  ;;  %v905_v1 = vmov (!%p211_p10), 1983009808   ;;  %v913_v48 = vmov (!%p211_p10), 0   ;;  %v580_v53 = vld [vmem:[%s1139_s3] sm:$0xff] (!%p211_p10) }
  0x11   : > { %214 = sbr.rel (%p211_p10) target bundleno = 442 (0x1ba), region = 40  ;;  %p244_p13 = scmp.lt.s32.totalorder (!%p211_p10), %s887_s21, 1  ;;  %v270_v2 = vunpack.c.l.s4 (!%p211_p10), %v905_v1  ;;  %519 = vst [vmem:[#allocation2 + $0x28] sm:$0xfc] (!%p211_p10), %v913_v48  ;;  %518 = vst [vmem:[#allocation2 + $0x20] sm:$0xfc] (!%p211_p10), %v913_v48  ;;  %563 = vmatprep.mubr.bf16.mxu0 (!%p211_p10), %v913_v48  ;;  %800 = vset.pattern.permute.xlu1 (!%p211_p10), %v913_v48 }
  0x12   : > { %s1015_s11 = scalar_select %p149_p11, %s883_s20, %s151_s9  }
  0x13   : > { %v271_v3 = vunpack.c.0.s8 (!%p211_p10), %v270_v2  ;;  %v273_v4 = vshrl.u32 (!%p211_p10), %v272_v0, 7  ;;  %s906_s8 = smov (!%p211_p10), 126   ;;  %s907_s9 = smov (!%p211_p10), 127   ;;  %799 = vset.pattern.permute.xlu0 (!%p211_p10), %v913_v48  ;;  %v572_v54 = vld [vmem:[%s1138_s2] sm:$0xff] (!%p211_p10)  ;;  %vm354_vm0 = vcmask (!%p211_p10), 785408   ;;  %vm322_vm1 = vcmask (!%p211_p10), 1031168  }
  0x14   : > { %s908_s10 = smov (!%p211_p10), 96   ;;  %v590_v55 = vld [vmem:[%s1140_s4] sm:$0xff] (!%p211_p10)  ;;  %vm290_vm2 = vcmask (!%p211_p10), 1039360   ;;  %vm385_vm3 = vcmask (!%p211_p10), 777216   ;;  %vm416_vm4 = vcmask (!%p211_p10), 769024   ;;  %vm448_vm5 = vcmask (!%p211_p10), 523264  }
  0x15   : > { %v1021_v5 = vsub.s32 (!%p211_p10), %v271_v3, %v273_v4  ;;  %vm480_vm6 = vcmask (!%p211_p10), 515072   ;;  %vm511_vm7 = vcmask (!%p211_p10), 506880   ;;  %vm527_vm8 = vcmask (!%p211_p10), 392192  }
  0x18   : > { %s243_s12 = scalar_select %p242_p12, %s891_s22, 1 }
  0x19   : > { %s245_s13 = scalar_select %p244_p13, %s887_s21, 1 }
  0x1a   : > { %s717_s14 = smul.u32 6, %s243_s12  ;;  %s909_s12 = smov 95  }
  0x1b   : > { %s716_s15 = smul.u32 3, %s245_s13  ;;  %s910_s13 = smov 94  }
  0x1d   : > { %s248_s16 = sadd.s32 %s717_s14, %s716_s15  ;;  %s911_s14 = smov 64  }
  0x1e   : > { %s707_s17 = sshll.u32 %s248_s16, 1  ;;  %s912_s15 = smov 63  }
  0x1f   : > { %s1026_s30 = scalar_lea.vmem %s1136_s0, %s707_s17  ;;  %s914_s16 = smov 62  }
  0x20   : > { %v297_v6 = vld [vmem:[%s1026_s30] sm:$0x3f] }
  0x21   : > { %v266_v7 = vld [vmem:[%s1026_s30] sm:$0x3f]  ;;  %v306_v9 = vrot.slane %v297_v6, %v1021_v5  ;;  %v299_v18 = vcombine.high %v297_v6, %v297_v6 }
  0x22   : > { %v329_v8 = vld [vmem:[%s1026_s30] sm:$0x3f]  ;;  %v282_v10 = vrot.slane %v266_v7, %v1021_v5  ;;  %v268_v13 = vcombine.low %v266_v7, %v266_v7 }
  0x23   : > { %v345_v11 = vrot.slane %v329_v8, %v1021_v5  ;;  %v331_v12 = vcombine.low %v329_v8, %v329_v8  ;;  %318 = vrot.lane.b32.xlu1 %v306_v9, %s906_s8  ;;  %v361_v16 = vld [vmem:[%s1026_s30] sm:$0x3f]  ;;  %v314_v19 = vcombine.low %v306_v9, %v306_v9  ;;  %v313_v27 = vrot.slane %v299_v18, %v1021_v5 }
  0x24   : > { %288 = vrot.lane.b32.xlu0 %v282_v10, %s907_s9  ;;  %v708_v17 = vld.sshfl [vmem:[%s1026_s30] sm:$0x33 pattern:$0x76325410]  ;;  %v275_v20 = vrot.slane %v268_v13, %v1021_v5  ;;  %v370_v21 = vrot.slane %v361_v16, %v1021_v5  ;;  %v363_v31 = vcombine.high %v361_v16, %v361_v16 }
  0x25   : > { %v347_v14 = vcombine.low %v345_v11, %v345_v11  ;;  %v338_v15 = vrot.slane %v331_v12, %v1021_v5  ;;  %264 = vst [vmem:[#allocation2] sm:$0x3] %v708_v17  ;;  %v392_v22 = vld [vmem:[%s1026_s30] sm:$0x3f]  ;;  %v261_v23 = vcombine.high %v708_v17, %v708_v17  ;;  %v315_v29 = vcombine.low %v313_v27, %v313_v27 }
  0x26   : > { %v394_v24 = vcombine.low %v392_v22, %v392_v22  ;;  %v378_v25 = vcombine.high %v370_v21, %v370_v21  ;;  %v283_v26 = vcombine.high %v275_v20, %v275_v20  ;;  %v423_v32 = vld [vmem:[%s1026_s30] sm:$0x3f]  ;;  %v377_v34 = vrot.slane %v363_v31, %v1021_v5 }
  0x27   : > { %352 = vrot.lane.b32.xlu1 %v347_v14, %s908_s10  ;;  %265 = vst [vmem:[#allocation2 + $0x8] sm:$0x3] %v261_v23  ;;  %v346_v30 = vcombine.low %v338_v15, %v338_v15  ;;  %v425_v35 = vcombine.high %v423_v32, %v423_v32  ;;  %v455_v36 = vld [vmem:[%s1026_s30] sm:$0x3f]  ;;  %v432_v37 = vrot.slane %v423_v32, %v1021_v5 }
  0x28   : > { %350 = vrot.lane.b32.xlu0 %v338_v15, %s908_s10  ;;  %v401_v28 = vrot.slane %v394_v24, %v1021_v5  ;;  %v408_v38 = vrot.slane %v392_v22, %v1021_v5  ;;  %v457_v39 = vcombine.low %v455_v36, %v455_v36  ;;  %v471_v43 = vrot.slane %v455_v36, %v1021_v5  ;;  %v487_v45 = vld [vmem:[%s1026_s30] sm:$0x3f] }
  0x29   : > { %v439_v40 = vrot.slane %v425_v35, %v1021_v5  ;;  %v440_v46 = vcombine.low %v432_v37, %v432_v37  ;;  %v496_v47 = vrot.slane %v487_v45, %v1021_v5  ;;  %v489_v51 = vcombine.high %v487_v45, %v487_v45 }
  0x2a   : > { %v409_v33 = vcombine.high %v401_v28, %v401_v28  ;;  %v464_v41 = vrot.slane %v457_v39, %v1021_v5  ;;  %v473_v44 = vcombine.low %v471_v43, %v471_v43 }
  0x2b   : > { %316 = vrot.lane.b32.xlu1 %v314_v19, %s906_s8  ;;  %v441_v42 = vcombine.low %v439_v40, %v439_v40  ;;  %v504_v49 = vcombine.high %v496_v47, %v496_v47  ;;  %v503_v52 = vrot.slane %v489_v51, %v1021_v5 }
  0x2c   : > { %284 = vrot.lane.b32.xlu0 %v275_v20, %s907_s9  ;;  %v472_v50 = vcombine.low %v464_v41, %v464_v41 }
  0x2f   : > { %381 = vrot.lane.b32.xlu1 %v378_v25, %s909_s12 }
  0x30   : > { %286 = vrot.lane.b32.xlu0 %v283_v26, %s907_s9 }
  0x33   : > { %320 = vrot.lane.b32.xlu1 %v315_v29, %s906_s8 }
  0x34   : > { %348 = vrot.lane.b32.xlu0 %v346_v30, %s908_s10 }
  0x37   : > { %412 = vrot.lane.b32.xlu1 %v409_v33, %s910_s13 }
  0x38   : > { %383 = vrot.lane.b32.xlu0 %v377_v34, %s909_s12 }
  0x3b   : > { %444 = vrot.lane.b32.xlu1 %v432_v37, %s911_s14 }
  0x3c   : > { %414 = vrot.lane.b32.xlu0 %v408_v38, %s910_s13  ;;  %v520_v38 = vld [vmem:[%s1137_s1] sm:$0xf] }
  0x3f   : > { %476 = vrot.lane.b32.xlu1 %v464_v41, %s912_s15 }
  0x40   : > { %446 = vrot.lane.b32.xlu0 %v441_v42, %s911_s14 }
  0x43   : > { %379 = vrot.lane.b32.xlu1 %v370_v21, %s909_s12  ;;  %s915_s12 = smov [#allocation3]  }
  0x44   : > { %478 = vrot.lane.b32.xlu0 %v473_v44, %s912_s15 }
  0x47   : > { %442 = vrot.lane.b32.xlu1 %v440_v46, %s911_s14 }
  0x48   : > { %410 = vrot.lane.b32.xlu0 %v401_v28, %s910_s13  ;;  %s239_s13 = sand.u32 1, %s879_s19  }
  0x49   : > { %s706_s14 = sshll.u32 %s239_s13, 4  ;;  %s603_s9 = scalar_lea.sflag [#allocation4], %s239_s13 }
  0x4a   : > { %s241_s27 = scalar_lea.vmem [#allocation3], %s706_s14  ;;  %s813_s14 = sshll.u32 %s915_s12, 4  ;;  %s814_s14 = int_to_ptr.vmem [resolvable:$false] %s813_s14 }
  0x4b   : > { %507 = vrot.lane.b32.xlu1 %v504_v49, %s914_s16  ;;  %s619_s30 = sshll.u32 %s241_s27, 4  ;;  %s1085_s30 = int_to_ptr.vmem [resolvable:$true] %s619_s30 }
  0x4c   : > { %474 = vrot.lane.b32.xlu0 %v472_v50, %s912_s15  ;;  %s711_s15 = sshll.u32 %s887_s21, 1  ;;  %s809_s10 = scalar_lea.vmem %s1085_s30, 256 }
  0x4d   : > { %p810_p0 = scmp.ne.s32.totalorder %s1085_s30, %s809_s10  ;;  %p816_p4 = scmp.lt.s32.totalorder %s1085_s30, %s814_s14 }
  0x4f   : > { %505 = vrot.lane.b32.xlu1 %v496_v47, %s914_s16  ;;  %p811_p1 = pnand %p810_p0, %p997_p3 }
  0x50   : > { %509 = vrot.lane.b32.xlu0 %v503_v52, %s914_s16  ;;  %s712_s16 = sshll.u32 %s891_s22, 2 }
  0x51   : > { %s615_s17 = sadd.s32 %s712_s16, %s711_s15  ;;  %p812_p2 = pneg %p811_p1 }
  0x52   : > { %s713_s26 = sshll.u32 %s615_s17, 7  ;;  %s815_s15 = scalar_lea.vmem %s814_s14, 512 }
  0x53   : > { %583 = vperm.xlu1 %800, %v580_v53   ;;  %s1083_s8 = scalar_lea.hbm %s1141_s5, %s713_s26  ;;  %p817_p5 = scmp.lt.s32.totalorder %s815_s15, %s809_s10 }
  0x54   : > { %575 = vperm.xlu0 %799, %v572_v54  }
  0x55   : > { %p818_p6 = por %p817_p5, %p816_p4 }
  0x57   : > { %593 = vperm.xlu1 %800, %v590_v55   ;;  %p819_p7 = pnand %p818_p6, %p812_p2 }
  0x95   : > { %v319_v56 = vpop.permute.xlu1 %318 }
  0x96   : > { %v289_v57 = vpop.permute.xlu0 %288 }
  0x99   : > { %v353_v58 = vpop.permute.xlu1 %352 }
  0x9a   : > { %v351_v59 = vpop.permute.xlu0 %350 }
  0x9b   : > { %v356_v60 = vsel %vm354_vm0, %v351_v59, %v353_v58 }
  0x9c   : > { %360 = vst [vmem:[#allocation2 + $0x8] sm:$0xc0] %v356_v60 }
  0x9d   : > { %v317_v61 = vpop.permute.xlu1 %316 }
  0x9e   : > { %v285_v62 = vpop.permute.xlu0 %284  ;;  %v323_v63 = vsel %vm322_vm1, %v317_v61, %v319_v56 }
  0x9f   : > { %327 = vst [vmem:[#allocation2] sm:$0x30] %v323_v63 }
  0xa1   : > { %v382_v0 = vpop.permute.xlu1 %381 }
  0xa2   : > { %v287_v1 = vpop.permute.xlu0 %286 }
  0xa3   : > { %v291_v2 = vsel %vm290_vm2, %v285_v62, %v287_v1  ;;  %v292_v3 = vsel %vm290_vm2, %v287_v1, %v289_v57 }
  0xa4   : > { %295 = vst [vmem:[#allocation2] sm:$0xc] %v291_v2  ;;  %296 = vst [vmem:[#allocation2 + $0x8] sm:$0xc] %v292_v3 }
  0xa5   : > { %v321_v4 = vpop.permute.xlu1 %320 }
  0xa6   : > { %v349_v5 = vpop.permute.xlu0 %348  ;;  %v324_v6 = vsel %vm322_vm1, %v319_v56, %v321_v4 }
  0xa7   : > { %v355_v7 = vsel %vm354_vm0, %v349_v5, %v351_v59  ;;  %328 = vst [vmem:[#allocation2 + $0x8] sm:$0x30] %v324_v6 }
  0xa8   : > { %359 = vst [vmem:[#allocation2] sm:$0xc0] %v355_v7 }
  0xa9   : > { %v413_v8 = vpop.permute.xlu1 %412 }
  0xaa   : > { %v384_v9 = vpop.permute.xlu0 %383 }
  0xab   : > { %v387_v10 = vsel %vm385_vm3, %v382_v0, %v384_v9 }
  0xac   : > { %391 = vst [vmem:[#allocation2 + $0x18] sm:$0x3] %v387_v10 }
  0xad   : > { %v445_v11 = vpop.permute.xlu1 %444 }
  0xae   : > { %v415_v12 = vpop.permute.xlu0 %414  ;;  %v522_v14 = vld [vmem:[#allocation2 + $0x8] sm:$0xff] }
  0xaf   : > { %v418_v13 = vsel %vm416_vm4, %v413_v8, %v415_v12  ;;  %v521_v15 = vld [vmem:[#allocation2] sm:$0xff]  ;;  %531 = vmatprep.subr.bf16.mxu0 %v522_v14 }
  0xb0   : > { %422 = vst [vmem:[#allocation2 + $0x18] sm:$0xc] %v418_v13  ;;  %532 = vmatpush1.bf16.msra.mxu0 %v521_v15 }
  0xb1   : > { %v477_v16 = vpop.permute.xlu1 %476 }
  0xb2   : > { %v447_v17 = vpop.permute.xlu0 %446 }
  0xb3   : > { %v450_v18 = vsel %vm448_vm5, %v445_v11, %v447_v17 }
  0xb4   : > { %454 = vst [vmem:[#allocation2 + $0x18] sm:$0x30] %v450_v18 }
  0xb5   : > { %v380_v19 = vpop.permute.xlu1 %379 }
  0xb6   : > { %v479_v20 = vpop.permute.xlu0 %478  ;;  %v386_v21 = vsel %vm385_vm3, %v380_v19, %v382_v0 }
  0xb7   : > { %v482_v22 = vsel %vm480_vm6, %v477_v16, %v479_v20  ;;  %390 = vst [vmem:[#allocation2 + $0x10] sm:$0x3] %v386_v21 }
  0xb8   : > { %486 = vst [vmem:[#allocation2 + $0x18] sm:$0xc0] %v482_v22 }
  0xb9   : > { %v443_v23 = vpop.permute.xlu1 %442 }
  0xba   : > { %v411_v24 = vpop.permute.xlu0 %410  ;;  %v449_v25 = vsel %vm448_vm5, %v443_v23, %v445_v11 }
  0xbb   : > { %v417_v26 = vsel %vm416_vm4, %v411_v24, %v413_v8  ;;  %453 = vst [vmem:[#allocation2 + $0x10] sm:$0x30] %v449_v25 }
  0xbc   : > { %421 = vst [vmem:[#allocation2 + $0x10] sm:$0xc] %v417_v26 }
  0xbd   : > { %v508_v27 = vpop.permute.xlu1 %507 }
  0xbe   : > { %v475_v28 = vpop.permute.xlu0 %474 }
  0xbf   : > { %v481_v29 = vsel %vm480_vm6, %v475_v28, %v477_v16  ;;  %v524_v30 = vld [vmem:[#allocation2 + $0x18] sm:$0xff] }
  0xc0   : > { %485 = vst [vmem:[#allocation2 + $0x10] sm:$0xc0] %v481_v29  ;;  %533 = vmatprep.subr.bf16.mxu0 %v524_v30 }
  0xc1   : > { %v506_v31 = vpop.permute.xlu1 %505 }
  0xc2   : > { %v510_v32 = vpop.permute.xlu0 %509  ;;  %v512_v33 = vsel %vm511_vm7, %v506_v31, %v508_v27 }
  0xc3   : > { %v513_v34 = vsel %vm511_vm7, %v508_v27, %v510_v32  ;;  %516 = vst [vmem:[#allocation2 + $0x20] sm:$0x3] %v512_v33 }
  0xc4   : > { %517 = vst [vmem:[#allocation2 + $0x28] sm:$0x3] %v513_v34 }
  0xc7   : > { %v523_v35 = vld [vmem:[#allocation2 + $0x10] sm:$0xff] }
  0xc8   : > { %534 = vmatpush1.bf16.msra.mxu0 %v523_v35 }
  0xca   : > { %v525_v37 = vld [vmem:[#allocation2 + $0x20] sm:$0xff] }
  0xcb   : > { %v526_v36 = vld [vmem:[#allocation2 + $0x28] sm:$0xff] }
  0xcc   : > { %535 = vmatprep.subr.bf16.mxu0 %v526_v36 }
  0xcd   : > { %536 = vmatpush1.bf16.msra.mxu0 %v525_v37 }
  0xd0   : > { %709 = vmatmul.mubr.msk.bf16.vlgmr.msra.gmra.mrb[0].mxu0 %vm527_vm8, %v520_v38 }
  0xd2   : > { %v584_v39 = vpop.permute.xlu1 %583 }
  0xd3   : > { %v576_v40 = vpop.permute.xlu0 %575 }
  0xd6   : > { %v594_v48 = vpop.permute.xlu1 %593 }
 0x1a3   : > { %v565_v41 = vpop.f32.mrb[0].mxu0 }
 0x1a4   : > { %v578_v42 = vmul.f32 %v576_v40, %v565_v41  ;;  %v567_v43 = vpop.f32.mrb[1].mxu0 }
 0x1a5   : > { %v579_v44 = vmul.f32 %v576_v40, %v567_v43  ;;  %v569_v45 = vpop.f32.mrb[2].mxu0 }
 0x1a6   : > { %v586_v46 = vadd.f32 %v584_v39, %v578_v42  ;;  %v570_v47 = vpop.f32.mrb[3].mxu0 }
 0x1a7   : > { %v587_v49 = vadd.f32 %v584_v39, %v579_v44 }
 0x1a8   : > { %vm588_vm9 = vcmp.ge.f32.partialorder %v586_v46, 0.0  ;;  %v596_v50 = vmul.f32 %v594_v48, %v586_v46 }
 0x1a9   : > { %vm589_vm10 = vcmp.ge.f32.partialorder %v587_v49, 0.0  ;;  %v597_v51 = vmul.f32 %v594_v48, %v587_v49 }
 0x1aa   : > { %v598_v52 = vsel %vm588_vm9, %v586_v46, %v596_v50 }
 0x1ab   : > { %v599_v53 = vsel %vm589_vm10, %v587_v49, %v597_v51  ;;  %600 = vst [vmem:[%s241_s27] sm:$0xff] %v598_v52 }
 0x1ac   : > { %601 = vst [vmem:[%s241_s27 + $0x8] sm:$0xff] %v599_v53 }
 0x1ad   : > { %822 = shalt.err (!%p819_p7)
}
 0x1ae   : > { %s823_s13 = scalar_lea.hbm %s1083_s8, 256  ;;  %s827_s26 = scalar_lea.hbm %s1141_s5, 1024 }
 0x1af   : > { %p824_p9 = scmp.ne.s32.totalorder %s1083_s8, %s823_s13  ;;  %p828_p12 = scmp.lt.u32.totalorder %s1083_s8, %s1141_s5 }
 0x1b0   : > { %p829_p13 = scmp.lt.u32.totalorder %s827_s26, %s823_s13  ;;  %p831_p1 = scmp.lt.u32.totalorder %s823_s13, %s1083_s8 }
 0x1b1   : > { %p825_p10 = pnand %p824_p9, %p997_p3 }
 0x1b2   : > { %p830_p0 = por %p829_p13, %p828_p12 }
 0x1b3   : > { %p826_p11 = pneg %p825_p10 }
 0x1b4   : > { %p832_p2 = por %p831_p1, %p830_p0 }
 0x1b6   : > { %p833_p4 = pnand %p832_p2, %p826_p11 }
 0x1b8   : > { %836 = shalt.err (!%p833_p4)
}
 0x1b9   : > { %718 = dma.vmem_to_hbm [thread:$0]  (%p997_p3), %s1085_s30, 256, %s1083_s8, %s603_s9  }
 0x1ba PF: > { %p724_p5 = scmp.ge.s32.totalorder %s903_s25, 2  ;;  %s631_s22 = sand.u32 1, %s875_s18  }
 0x1bb   : > { %s632_s10 = scalar_lea.sflag [#allocation4], %s631_s22 }
 0x1bc   : > { %p721_p6 = pnand %p724_p5, %p1006_p8 }
 0x1be   : > { %870 = dma.done.wait (!%p721_p6), %s632_s10, 256  }
 0x1bf   : > { %872 = vsyncadd (!%p721_p6), %s632_s10, 4294967040  ;;  %s18_s25 = sadd.s32 1, %s903_s25   ;;  %s1144_s18 = smov %s879_s19 }
 0x1c0   : > { %p15_p7 = scmp.ge.s32.totalorder %s18_s25, 6   ;;  %s1145_s19 = smov %s883_s20 }
 0x1c1   : > { %s1146_s20 = smov %s1015_s11  ;;  %s1147_s21 = smov %s895_s23 }
 0x1c2   : > { %s1148_s22 = smov %s899_s24  ;;  %s1149_s23 = smov %s1152_s28 }
 0x1c3   : > { %s1150_s24 = smov %s1156_s29  ;;  %17 = sbr.rel (!%p15_p7) target bundleno = 5 (0x5), region = 75 }
 0x1ca   :  { %637 = vsyncpa [#allocation4], 1 }
 0x1cb   :  { %639 = vsyncpa [#allocation4 + $0x1], 1 }

</bundles_post_ra>
